<compile_context>
chip_gen: v7x
topology: tpu7x:2x2x1
jax: 0.10.0
libtpu: 0.0.40
codegen_flags: <defaults>
</compile_context>

<pallas_src>
import math
from functools import lru_cache, partial

import numpy as np
import jax
import jax.numpy as jnp
from jax.experimental import pallas as pl
from jax.experimental.pallas import tpu as pltpu

DEFAULT_SR = 22050
DF_SR = 48000  # DeepFilterNet internal sampling rate


def _cdiv(a, b):
    return -(-a // b)


def _round_up(x, m):
    return _cdiv(x, m) * m


# ----------------------------- Pallas kernels -----------------------------

def _absmax_kernel(x_ref, o_ref, acc_ref):
    # Running max of |x| across the grid into a (1, 1) VMEM accumulator.
    @pl.when(pl.program_id(0) == 0)
    def _():
        acc_ref[...] = jnp.zeros_like(acc_ref)

    m = jnp.max(jnp.abs(x_ref[...]).astype(jnp.float32), axis=(0, 1),
                keepdims=True)
    acc_ref[...] = jnp.maximum(acc_ref[...], m)

    @pl.when(pl.program_id(0) == pl.num_programs(0) - 1)
    def _():
        o_ref[...] = acc_ref[...]


def _resample_kernel(scale_ref, xa_ref, xb_ref, fa_ref, fb_ref, o_ref):
    # Polyphase filtering as two MXU matmuls (bf16 in, f32 accumulate):
    #   out[f, p] = sum_{j<orig} xa[f, j] * fa[j, p]          (main columns)
    #             + sum_{j<2w}   xb[f, j] * fb[j, p]          (overlap tail)
    # The folded volume-normalization scale (or 1.0) is applied in the
    # epilogue in f32.
    acc = jnp.dot(xa_ref[...], fa_ref[...], preferred_element_type=jnp.float32)
    acc = acc + jnp.dot(xb_ref[...], fb_ref[...],
                        preferred_element_type=jnp.float32)
    o_ref[...] = (acc * scale_ref[0, 0]).astype(o_ref.dtype)


def _scale_kernel(scale_ref, x_ref, o_ref):
    o_ref[...] = x_ref[...] * scale_ref[0, 0]


# ----------------------------- tiling helpers ------------------------------

def _pick_tiling(n_frames):
    """Pick (tile_rows, padded_rows) for the resample matmul.

    Prefers the smallest amount of padded (wasted) output rows, then the
    biggest tile; the step count is rounded up to an even number so the
    "parallel" grid splits evenly across v7x's two TensorCores.
    """
    best = None
    for tm in (2048, 1024, 512, 256, 128, 64, 32, 16, 8):
        steps = max(2, _cdiv(n_frames, tm))
        steps = _round_up(steps, 2)          # even -> both TCs busy on v7x
        padded = steps * tm
        key = (padded, steps)
        if best is None or key < best[0]:
            best = (key, tm, padded)
    return best[1], best[2]


# ----------------------------- filter bank ----------------------------------

@lru_cache(maxsize=None)
def _poly_filter(orig_freq, new_freq, lowpass_filter_width=6, rolloff=0.99):
    """torchaudio-style windowed-sinc (hann) polyphase filter bank.

    Returns NUMPY only so caching is safe under jit tracing (no tracer leak).
    """
    g = math.gcd(int(orig_freq), int(new_freq))
    orig = int(orig_freq) // g
    new = int(new_freq) // g
    base_freq = min(orig, new) * rolloff
    width = int(math.ceil(lowpass_filter_width * orig / base_freq))
    idx = np.arange(-width, width + orig, dtype=np.float64) / orig        # (K,)
    t = np.arange(0, -new, -1, dtype=np.float64)[:, None] / new + idx[None, :]
    t = np.clip(t * base_freq, -lowpass_filter_width, lowpass_filter_width)
    window = np.cos(t * math.pi / lowpass_filter_width / 2.0) ** 2
    t = t * math.pi
    scale = base_freq / orig
    kernels = np.where(t == 0.0, 1.0, np.sin(t) / np.where(t == 0.0, 1.0, t))
    kernels = kernels * window * scale                                    # (new, K)
    filt = np.ascontiguousarray(kernels.T).astype(np.float32)             # (K, new)
    return filt, width, orig, new


# ----------------------------- wrappers -------------------------------------

def _resample(wav, orig_freq, new_freq, *, vol_norm=False,
              out_dtype=jnp.float32):
    """torchaudio.functional.resample semantics; hot path is MXU matmuls.

    If `vol_norm` is True, max(|wav|) is reduced from the same bf16 2-D
    layout (one Pallas pass) and 1/max is applied in the matmul epilogue —
    the resample is linear so this is exact folding.
    """
    filt_np, width, orig, new = _poly_filter(int(orig_freq), int(new_freq))
    k = int(filt_np.shape[0])                      # = orig + 2*width
    two_w = k - orig
    # TODO(synk): extreme downsampling ratios (2*width > orig) would need a
    #             multi-slab frame split; not reachable with 22050<->48000.
    assert two_w <= orig, "unsupported resampling ratio for 2-slab framing"

    t_len = int(wav.shape[0])
    n_frames = t_len // orig + 1
    tm, f_pad = _pick_tiling(n_frames)
    new_pad = _round_up(new, 128)                  # lane-dense output stores

    # Filter bank split into main/tail halves, phase dim zero-padded, bf16.
    fpad_np = np.zeros((k, new_pad), np.float32)
    fpad_np[:, :new] = filt_np
    fa = jnp.asarray(fpad_np[:orig], dtype=jnp.bfloat16)     # (orig, new_pad)
    fb = jnp.asarray(fpad_np[orig:], dtype=jnp.bfloat16)     # (2w,   new_pad)

    # Signal as (rows, orig) bf16: frame f = row f ++ first 2w cols of row f+1.
    # No gather, no int32 index array, no frames matrix in HBM.
    n_rows = f_pad + tm          # extra zero rows keep the abs-max grid aligned
    wav_pad = jnp.pad(wav.astype(jnp.bfloat16),
                      (width, n_rows * orig - width - t_len))
    x2d = wav_pad.reshape(n_rows, orig)
    xb = jax.lax.slice(x2d, (1, 0), (f_pad + 1, two_w))      # small (f_pad, 2w)

    if vol_norm:
        amax = pl.pallas_call(
            _absmax_kernel,
            out_shape=jax.ShapeDtypeStruct((1, 1), jnp.float32),
            grid=(n_rows // tm,),
            in_specs=[pl.BlockSpec((tm, orig), lambda i: (i, 0))],
            out_specs=pl.BlockSpec((1, 1), lambda i: (0, 0)),
            scratch_shapes=[pltpu.VMEM((1, 1), jnp.float32)],
            compiler_params=pltpu.CompilerParams(
                dimension_semantics=("arbitrary",)),
        )(x2d)
        scale = (1.0 / amax).astype(jnp.float32)   # inf on silence (torch semantics)
    else:
        scale = jnp.ones((1, 1), jnp.float32)

    out = pl.pallas_call(
        _resample_kernel,
        out_shape=jax.ShapeDtypeStruct((f_pad, new_pad), out_dtype),
        grid=(f_pad // tm,),
        in_specs=[
            pl.BlockSpec(memory_space=pltpu.MemorySpace.SMEM),    # folded scale
            pl.BlockSpec((tm, orig), lambda i: (i, 0)),           # main columns
            pl.BlockSpec((tm, two_w), lambda i: (i, 0)),          # overlap tail
            pl.BlockSpec((orig, new_pad), lambda i: (0, 0)),      # filter (resident)
            pl.BlockSpec((two_w, new_pad), lambda i: (0, 0)),     # filter tail
        ],
        out_specs=pl.BlockSpec((tm, new_pad), lambda i: (i, 0)),
        compiler_params=pltpu.CompilerParams(
            dimension_semantics=("parallel",)),
    )(scale, x2d, xb, fa, fb)

    target_length = _cdiv(new * t_len, orig)
    assert n_frames * new >= target_length         # no silent truncation
    return out[:n_frames, :new].reshape(-1)[:target_length]


def _normalize_volume(wav):
    """Standalone wav / max(|wav|) (only used when no resample absorbs it)."""
    t = int(wav.shape[0])
    rows = _round_up(max(_cdiv(t, 128), 1), 8)
    tr = min(rows, 1024)
    rows_p = _round_up(rows, tr)
    x2d = jnp.pad(wav.astype(jnp.float32),
                  (0, rows_p * 128 - t)).reshape(rows_p, 128)

    amax = pl.pallas_call(
        _absmax_kernel,
        out_shape=jax.ShapeDtypeStruct((1, 1), jnp.float32),
        grid=(rows_p // tr,),
        in_specs=[pl.BlockSpec((tr, 128), lambda i: (i, 0))],
        out_specs=pl.BlockSpec((1, 1), lambda i: (0, 0)),
        scratch_shapes=[pltpu.VMEM((1, 1), jnp.float32)],
        compiler_params=pltpu.CompilerParams(
            dimension_semantics=("arbitrary",)),
    )(x2d)
    scale = (1.0 / amax).astype(jnp.float32)

    y2d = pl.pallas_call(
        _scale_kernel,
        out_shape=jax.ShapeDtypeStruct((rows_p, 128), jnp.float32),
        grid=(rows_p // tr,),
        in_specs=[pl.BlockSpec(memory_space=pltpu.MemorySpace.SMEM),
                  pl.BlockSpec((tr, 128), lambda i: (i, 0))],
        out_specs=pl.BlockSpec((tr, 128), lambda i: (i, 0)),
        compiler_params=pltpu.CompilerParams(
            dimension_semantics=("parallel",)),
    )(scale, x2d)
    return y2d.reshape(-1)[:t]


# ----------------------------- module ---------------------------------------

class VoiceExtractor:
    """JAX/Pallas re-implementation of VoiceExtractor.forward (default path)."""

    def __init__(self, sr=DEFAULT_SR, df_sr=DF_SR):
        self.sr = int(sr)
        self.df_sr = int(df_sr)
        self._jitted = {}
        # No learnable parameters on the implemented path; DeepFilterNet
        # weights are an external checkpoint (see TODO at top of file).

    def _forward_impl(self, wav, *, sr, skip_vol_norm, skip_df, return_noise):
        wav = wav.astype(jnp.float32)
        vol_norm = not skip_vol_norm

        if not skip_df:
            # Resample to DeepFilterNet's rate; 1/max(|wav|) folded in.
            # Intermediate stays bf16 (same rounding the second resample's
            # frame cast would apply anyway; halves the write).
            pre = _resample(wav, sr, self.df_sr, vol_norm=vol_norm,
                            out_dtype=jnp.bfloat16)
            # TODO(synk): enhance(self.model, self.df_state, ...) is an external
            #             pretrained model — identity passthrough here.
            voice = pre
            out = _resample(voice, self.df_sr, self.sr, vol_norm=False,
                            out_dtype=jnp.float32)
            if return_noise:
                # noise = resample(ori_wav) - voice == 0 exactly while the
                # enhancement is an identity passthrough; skip the dead
                # subtract + back-resample of a zero signal.
                return out, jnp.zeros_like(out)
            return out

        # skip_df path
        if int(sr) != self.sr:
            out = _resample(wav, sr, self.sr, vol_norm=vol_norm,
                            out_dtype=jnp.float32)
        elif vol_norm:
            out = _normalize_volume(wav)
        else:
            out = wav
        if return_noise:
            return out, out          # matches torch: noise is None -> (wav, sr, wav)
        return out

    def forward(self, wav, sr, skip_vol_norm=False, skip_df=False,
                skip_spectral=True, spectral_first=False, use_ori=False,
                noise_removal_limit_db=0.0, return_noise=False):
        assert wav.ndim == 1, "Input must be T."
        if not skip_spectral:
            # TODO(synk): noisereduce stationary spectral gating not implemented.
            raise NotImplementedError("spectral gating (TG) is not implemented")
        del spectral_first, use_ori, noise_removal_limit_db  # unused on this path
        key = (int(sr), bool(skip_vol_norm), bool(skip_df), bool(return_noise))
        if key not in self._jitted:
            self._jitted[key] = jax.jit(partial(
                self._forward_impl, sr=key[0], skip_vol_norm=key[1],
                skip_df=key[2], return_noise=key[3]))
        res = self._jitted[key](wav)
        if key[3]:
            out, noise = res
            return out, self.sr, noise
        return res, self.sr

    __call__ = forward


# ----------------------------- validation -----------------------------------

def _reference_forward(wav, in_sr, df_sr, out_sr):
    """Pure-JAX f32 reference of the default forward path (no Pallas)."""
    w = wav / jnp.max(jnp.abs(wav))

    def rs(x, of, nf):
        if int(of) == int(nf):
            return x
        filt_np, width, orig, new = _poly_filter(int(of), int(nf))
        filt = jnp.asarray(filt_np, jnp.float32)
        k = int(filt_np.shape[0])
        t = int(x.shape[0])
        n_frames = t // orig + 1
        xp = jnp.pad(x, (width, (n_frames - 1) * orig + k - width - t))
        idx = jnp.arange(n_frames)[:, None] * orig + jnp.arange(k)[None, :]
        out = jnp.einsum("fk,kn->fn", xp[idx], filt,
                         precision=jax.lax.Precision.HIGHEST)
        return out.reshape(-1)[:_cdiv(new * t, orig)]

    return rs(rs(w, in_sr, df_sr), df_sr, out_sr)


if __name__ == "__main__":
    key = jax.random.PRNGKey(0)
    T = 2205  # 0.1 s at 22050 Hz
    wav = 0.3 * jax.random.normal(key, (T,), dtype=jnp.float32)

    extractor = VoiceExtractor(sr=DEFAULT_SR)

    out_wav, out_sr = extractor.forward(wav, DEFAULT_SR)
    out_wav = jax.block_until_ready(out_wav)
    assert out_wav.ndim == 1 and out_sr == DEFAULT_SR
    assert out_wav.shape[0] == T
    assert bool(jnp.all(jnp.isfinite(out_wav)))

    # Validate the Pallas pipeline (bf16 inputs, f32 accumulation) against a
    # pure-JAX f32 reference of the same path.
    ref = jax.block_until_ready(_reference_forward(wav, DEFAULT_SR, DF_SR, DEFAULT_SR))
    max_err = float(jnp.max(jnp.abs(out_wav - ref)))
    assert max_err < 5e-2, f"max abs err vs reference: {max_err}"

    # Noise branch: exact silence while the enhancement step is an identity.
    v, sr2, noise = extractor.forward(wav, DEFAULT_SR, return_noise=True)
    jax.block_until_ready((v, noise))
    assert sr2 == DEFAULT_SR and v.shape == out_wav.shape == noise.shape
    assert float(jnp.max(jnp.abs(noise))) == 0.0

    # skip_df path exercises the standalone abs-max + scale kernels.
    v2, sr3 = extractor.forward(wav, DEFAULT_SR, skip_df=True)
    v2 = jax.block_until_ready(v2)
    ref2 = wav / jnp.max(jnp.abs(wav))
    assert sr3 == DEFAULT_SR
    assert float(jnp.max(jnp.abs(v2 - ref2))) < 1e-5

    print("KERNEL_OK")
</pallas_src>

<mosaic_0001>
module attributes {stable_mosaic.version = 11 : i64} {
  func.func @_absmax_kernel(%arg0: i32, %arg1: memref<8x147xbf16, #tpu.memory_space<vmem>>, %arg2: memref<1x1xf32, #tpu.memory_space<vmem>>, %arg3: memref<1x1xf32, #tpu.memory_space<vmem>>) attributes {dimension_semantics = [#tpu.dimension_semantics<arbitrary>], iteration_bounds = array<i64: 3>, scalar_prefetch = 0 : i64, scratch_operands = 1 : i64, tpu.core_type = #tpu.core_type<tc>, window_params = [{transform_indices = @transform_0, window_bounds = array<i64: 8, 147>}, {pipeline_mode = #tpu.pipeline_mode<synchronous>, transform_indices = @transform_1, window_bounds = array<i64: 1, 1>}]} {
    %c0_i32 = arith.constant 0 : i32
    %0 = arith.cmpi eq, %arg0, %c0_i32 : i32
    %1 = arith.extui %0 : i1 to i32
    %c0_i32_0 = arith.constant 0 : i32
    %2 = arith.cmpi ne, %1, %c0_i32_0 : i32
    scf.if %2 {
      %cst_7 = arith.constant 0.000000e+00 : f32
      %17 = vector.broadcast %cst_7 : f32 to vector<1x1xf32>
      %c0_8 = arith.constant 0 : index
      %c0_9 = arith.constant 0 : index
      %18 = vector.load %arg3[%c0_8, %c0_9] : memref<1x1xf32, #tpu.memory_space<vmem>>, vector<1x1xf32>
      tpu.vector_store %arg3[%c0_8, %c0_9], %17 {strides = array<i32>} : memref<1x1xf32, #tpu.memory_space<vmem>>, vector<1x1xf32>,
    } else {
    }
    %c0 = arith.constant 0 : index
    %c0_1 = arith.constant 0 : index
    %3 = vector.load %arg1[%c0, %c0_1] : memref<8x147xbf16, #tpu.memory_space<vmem>>, vector<8x147xbf16>
    %4 = math.absf %3 : vector<8x147xbf16>
    %5 = arith.extf %4 : vector<8x147xbf16> to vector<8x147xf32>
    %6 = vector.shape_cast %5 : vector<8x147xf32> to vector<1x8x147xf32>
    %cst = arith.constant dense<0xFF800000> : vector<1xf32>
    %7 = vector.multi_reduction <maximumf>, %6, %cst [1, 2] : vector<1x8x147xf32> to vector<1xf32>
    %8 = vector.shape_cast %7 : vector<1xf32> to vector<1x1x1xf32>
    %9 = vector.extract %8[0, 0, 0] : f32 from vector<1x1x1xf32>
    %10 = vector.broadcast %9 : f32 to vector<1x1xf32>
    %c0_2 = arith.constant 0 : index
    %c0_3 = arith.constant 0 : index
    %11 = vector.load %arg3[%c0_2, %c0_3] : memref<1x1xf32, #tpu.memory_space<vmem>>, vector<1x1xf32>
    %12 = arith.maximumf %11, %10 : vector<1x1xf32>
    %c0_4 = arith.constant 0 : index
    %c0_5 = arith.constant 0 : index
    %13 = vector.load %arg3[%c0_4, %c0_5] : memref<1x1xf32, #tpu.memory_space<vmem>>, vector<1x1xf32>
    tpu.vector_store %arg3[%c0_4, %c0_5], %12 {strides = array<i32>} : memref<1x1xf32, #tpu.memory_space<vmem>>, vector<1x1xf32>,
    %c2_i32 = arith.constant 2 : i32
    %14 = arith.cmpi eq, %arg0, %c2_i32 : i32
    %15 = arith.extui %14 : i1 to i32
    %c0_i32_6 = arith.constant 0 : i32
    %16 = arith.cmpi ne, %15, %c0_i32_6 : i32
    scf.if %16 {
      %c0_7 = arith.constant 0 : index
      %c0_8 = arith.constant 0 : index
      %17 = vector.load %arg3[%c0_7, %c0_8] : memref<1x1xf32, #tpu.memory_space<vmem>>, vector<1x1xf32>
      %c0_9 = arith.constant 0 : index
      %c0_10 = arith.constant 0 : index
      %18 = vector.load %arg2[%c0_9, %c0_10] : memref<1x1xf32, #tpu.memory_space<vmem>>, vector<1x1xf32>
      tpu.vector_store %arg2[%c0_9, %c0_10], %17 {strides = array<i32>} : memref<1x1xf32, #tpu.memory_space<vmem>>, vector<1x1xf32>,
    } else {
    }
    return
  }
  func.func @transform_0(%arg0: i32) -> (i32, i32) {
    %c0_i32 = arith.constant 0 : i32
    %c0_i32_0 = arith.constant 0 : i32
    return %arg0, %c0_i32 : i32, i32
  }
  func.func @transform_1(%arg0: i32) -> (i32, i32) {
    %c0_i32 = arith.constant 0 : i32
    %c0_i32_0 = arith.constant 0 : i32
    %c0_i32_1 = arith.constant 0 : i32
    return %c0_i32, %c0_i32_0 : i32, i32
  }
}

module attributes {stable_mosaic.version = 11 : i64} {
  func.func @_resample_kernel(%arg0: i32, %arg1: memref<1x1xf32, #tpu.memory_space<smem>>, %arg2: memref<8x147xbf16, #tpu.memory_space<vmem>>, %arg3: memref<8x14xbf16, #tpu.memory_space<vmem>>, %arg4: memref<147x384xbf16, #tpu.memory_space<vmem>>, %arg5: memref<14x384xbf16, #tpu.memory_space<vmem>>, %arg6: memref<8x384xbf16, #tpu.memory_space<vmem>>) attributes {dimension_semantics = [#tpu.dimension_semantics<parallel>], iteration_bounds = array<i64: 2>, scalar_prefetch = 0 : i64, scratch_operands = 0 : i64, tpu.core_type = #tpu.core_type<tc>, window_params = [{transform_indices = @transform_0, window_bounds = array<i64: 1, 1>}, {transform_indices = @transform_1, window_bounds = array<i64: 8, 147>}, {transform_indices = @transform_2, window_bounds = array<i64: 8, 14>}, {pipeline_mode = #tpu.pipeline_mode<synchronous>, transform_indices = @transform_3, window_bounds = array<i64: 147, 384>}, {pipeline_mode = #tpu.pipeline_mode<synchronous>, transform_indices = @transform_4, window_bounds = array<i64: 14, 384>}, {transform_indices = @transform_5, window_bounds = array<i64: 8, 384>}]} {
    %c0 = arith.constant 0 : index
    %c0_0 = arith.constant 0 : index
    %0 = vector.load %arg2[%c0, %c0_0] : memref<8x147xbf16, #tpu.memory_space<vmem>>, vector<8x147xbf16>
    %c0_1 = arith.constant 0 : index
    %c0_2 = arith.constant 0 : index
    %1 = vector.load %arg4[%c0_1, %c0_2] : memref<147x384xbf16, #tpu.memory_space<vmem>>, vector<147x384xbf16>
    %cst = arith.constant dense<0.000000e+00> : vector<8x384xf32>
    %2 = tpu.matmul %0, %1, %cst {dimension_numbers = #tpu.dot_dimension_numbers<[1], [0], [0], [1], [0, 0, 1, 1], [], []>} : vector<8x147xbf16>, vector<147x384xbf16>, vector<8x384xf32> -> vector<8x384xf32>
    %c0_3 = arith.constant 0 : index
    %c0_4 = arith.constant 0 : index
    %3 = vector.load %arg3[%c0_3, %c0_4] : memref<8x14xbf16, #tpu.memory_space<vmem>>, vector<8x14xbf16>
    %c0_5 = arith.constant 0 : index
    %c0_6 = arith.constant 0 : index
    %4 = vector.load %arg5[%c0_5, %c0_6] : memref<14x384xbf16, #tpu.memory_space<vmem>>, vector<14x384xbf16>
    %cst_7 = arith.constant dense<0.000000e+00> : vector<8x384xf32>
    %5 = tpu.matmul %3, %4, %cst_7 {dimension_numbers = #tpu.dot_dimension_numbers<[1], [0], [0], [1], [0, 0, 1, 1], [], []>} : vector<8x14xbf16>, vector<14x384xbf16>, vector<8x384xf32> -> vector<8x384xf32>
    %6 = arith.addf %2, %5 : vector<8x384xf32>
    %c0_8 = arith.constant 0 : index
    %c0_9 = arith.constant 0 : index
    %7 = memref.load %arg1[%c0_8, %c0_9] : memref<1x1xf32, #tpu.memory_space<smem>>
    %8 = vector.broadcast %7 : f32 to vector<8x384xf32>
    %9 = arith.mulf %6, %8 : vector<8x384xf32>
    %10 = arith.truncf %9 : vector<8x384xf32> to vector<8x384xbf16>
    %c0_10 = arith.constant 0 : index
    %c0_11 = arith.constant 0 : index
    %11 = vector.load %arg6[%c0_10, %c0_11] : memref<8x384xbf16, #tpu.memory_space<vmem>>, vector<8x384xbf16>
    tpu.vector_store %arg6[%c0_10, %c0_11], %10 {strides = array<i32>} : memref<8x384xbf16, #tpu.memory_space<vmem>>, vector<8x384xbf16>,
    return
  }
  func.func @transform_0(%arg0: i32) -> (i32, i32) {
    %c0_i32 = arith.constant 0 : i32
    %c0_i32_0 = arith.constant 0 : i32
    %c0_i32_1 = arith.constant 0 : i32
    return %c0_i32, %c0_i32_0 : i32, i32
  }
  func.func @transform_1(%arg0: i32) -> (i32, i32) {
    %c0_i32 = arith.constant 0 : i32
    %c0_i32_0 = arith.constant 0 : i32
    return %arg0, %c0_i32 : i32, i32
  }
  func.func @transform_2(%arg0: i32) -> (i32, i32) {
    %c0_i32 = arith.constant 0 : i32
    %c0_i32_0 = arith.constant 0 : i32
    return %arg0, %c0_i32 : i32, i32
  }
  func.func @transform_3(%arg0: i32) -> (i32, i32) {
    %c0_i32 = arith.constant 0 : i32
    %c0_i32_0 = arith.constant 0 : i32
    %c0_i32_1 = arith.constant 0 : i32
    return %c0_i32, %c0_i32_0 : i32, i32
  }
  func.func @transform_4(%arg0: i32) -> (i32, i32) {
    %c0_i32 = arith.constant 0 : i32
    %c0_i32_0 = arith.constant 0 : i32
    %c0_i32_1 = arith.constant 0 : i32
    return %c0_i32, %c0_i32_0 : i32, i32
  }
  func.func @transform_5(%arg0: i32) -> (i32, i32) {
    %c0_i32 = arith.constant 0 : i32
    %c0_i32_0 = arith.constant 0 : i32
    return %arg0, %c0_i32 : i32, i32
  }
}

module attributes {stable_mosaic.version = 11 : i64} {
  func.func @_resample_kernel(%arg0: i32, %arg1: memref<1x1xf32, #tpu.memory_space<smem>>, %arg2: memref<8x320xbf16, #tpu.memory_space<vmem>>, %arg3: memref<8x28xbf16, #tpu.memory_space<vmem>>, %arg4: memref<320x256xbf16, #tpu.memory_space<vmem>>, %arg5: memref<28x256xbf16, #tpu.memory_space<vmem>>, %arg6: memref<8x256xf32, #tpu.memory_space<vmem>>) attributes {dimension_semantics = [#tpu.dimension_semantics<parallel>], iteration_bounds = array<i64: 2>, scalar_prefetch = 0 : i64, scratch_operands = 0 : i64, tpu.core_type = #tpu.core_type<tc>, window_params = [{transform_indices = @transform_0, window_bounds = array<i64: 1, 1>}, {transform_indices = @transform_1, window_bounds = array<i64: 8, 320>}, {transform_indices = @transform_2, window_bounds = array<i64: 8, 28>}, {pipeline_mode = #tpu.pipeline_mode<synchronous>, transform_indices = @transform_3, window_bounds = array<i64: 320, 256>}, {pipeline_mode = #tpu.pipeline_mode<synchronous>, transform_indices = @transform_4, window_bounds = array<i64: 28, 256>}, {transform_indices = @transform_5, window_bounds = array<i64: 8, 256>}]} {
    %c0 = arith.constant 0 : index
    %c0_0 = arith.constant 0 : index
    %0 = vector.load %arg2[%c0, %c0_0] : memref<8x320xbf16, #tpu.memory_space<vmem>>, vector<8x320xbf16>
    %c0_1 = arith.constant 0 : index
    %c0_2 = arith.constant 0 : index
    %1 = vector.load %arg4[%c0_1, %c0_2] : memref<320x256xbf16, #tpu.memory_space<vmem>>, vector<320x256xbf16>
    %cst = arith.constant dense<0.000000e+00> : vector<8x256xf32>
    %2 = tpu.matmul %0, %1, %cst {dimension_numbers = #tpu.dot_dimension_numbers<[1], [0], [0], [1], [0, 0, 1, 1], [], []>} : vector<8x320xbf16>, vector<320x256xbf16>, vector<8x256xf32> -> vector<8x256xf32>
    %c0_3 = arith.constant 0 : index
    %c0_4 = arith.constant 0 : index
    %3 = vector.load %arg3[%c0_3, %c0_4] : memref<8x28xbf16, #tpu.memory_space<vmem>>, vector<8x28xbf16>
    %c0_5 = arith.constant 0 : index
    %c0_6 = arith.constant 0 : index
    %4 = vector.load %arg5[%c0_5, %c0_6] : memref<28x256xbf16, #tpu.memory_space<vmem>>, vector<28x256xbf16>
    %cst_7 = arith.constant dense<0.000000e+00> : vector<8x256xf32>
    %5 = tpu.matmul %3, %4, %cst_7 {dimension_numbers = #tpu.dot_dimension_numbers<[1], [0], [0], [1], [0, 0, 1, 1], [], []>} : vector<8x28xbf16>, vector<28x256xbf16>, vector<8x256xf32> -> vector<8x256xf32>
    %6 = arith.addf %2, %5 : vector<8x256xf32>
    %c0_8 = arith.constant 0 : index
    %c0_9 = arith.constant 0 : index
    %7 = memref.load %arg1[%c0_8, %c0_9] : memref<1x1xf32, #tpu.memory_space<smem>>
    %8 = vector.broadcast %7 : f32 to vector<8x256xf32>
    %9 = arith.mulf %6, %8 : vector<8x256xf32>
    %c0_10 = arith.constant 0 : index
    %c0_11 = arith.constant 0 : index
    %10 = vector.load %arg6[%c0_10, %c0_11] : memref<8x256xf32, #tpu.memory_space<vmem>>, vector<8x256xf32>
    tpu.vector_store %arg6[%c0_10, %c0_11], %9 {strides = array<i32>} : memref<8x256xf32, #tpu.memory_space<vmem>>, vector<8x256xf32>,
    return
  }
  func.func @transform_0(%arg0: i32) -> (i32, i32) {
    %c0_i32 = arith.constant 0 : i32
    %c0_i32_0 = arith.constant 0 : i32
    %c0_i32_1 = arith.constant 0 : i32
    return %c0_i32, %c0_i32_0 : i32, i32
  }
  func.func @transform_1(%arg0: i32) -> (i32, i32) {
    %c0_i32 = arith.constant 0 : i32
    %c0_i32_0 = arith.constant 0 : i32
    return %arg0, %c0_i32 : i32, i32
  }
  func.func @transform_2(%arg0: i32) -> (i32, i32) {
    %c0_i32 = arith.constant 0 : i32
    %c0_i32_0 = arith.constant 0 : i32
    return %arg0, %c0_i32 : i32, i32
  }
  func.func @transform_3(%arg0: i32) -> (i32, i32) {
    %c0_i32 = arith.constant 0 : i32
    %c0_i32_0 = arith.constant 0 : i32
    %c0_i32_1 = arith.constant 0 : i32
    return %c0_i32, %c0_i32_0 : i32, i32
  }
  func.func @transform_4(%arg0: i32) -> (i32, i32) {
    %c0_i32 = arith.constant 0 : i32
    %c0_i32_0 = arith.constant 0 : i32
    %c0_i32_1 = arith.constant 0 : i32
    return %c0_i32, %c0_i32_0 : i32, i32
  }
  func.func @transform_5(%arg0: i32) -> (i32, i32) {
    %c0_i32 = arith.constant 0 : i32
    %c0_i32_0 = arith.constant 0 : i32
    return %arg0, %c0_i32 : i32, i32
  }
}

</mosaic_0001>

<bundles_post_ra>
// kernel: _forward_impl.3
= control target key start
LH: loop header
LB: loop body
LE: loop exit
PB: predicated region body
PF: predicated region fallthrough
CT: control target
= control target key end

     0   :  { %6 = vsyncpa [#allocation4], 0  ;;  %s263_s6 = smov 0   ;;  %s306_s0 = inlined_call_operand.vmem [shape: bf16[24,147], index: 0, kind: input, shape index: {}]   ;;  %s307_s1 = inlined_call_operand.hbm [shape: f32[1,1], index: 1, kind: output, shape index: {}]  }
   0x1 LB: > { %s269_s7 = sadd.s32 4294967295, %s249_s6   ;;  %p185_p0 = scmp.ge.s32.totalorder %s249_s6, 1  ;;  %s249_s6 = sphi %s263_s6, %s12_s6  }
   0x2   : > { %p83_p1 = scmp.lt.s32.totalorder %s249_s6, 4 }
   0x4   : > { %p84_p2 = pnand %p185_p0, %p83_p1 }
   0x5   : > { %p98_p3 = scmp.lt.s32.totalorder (!%p84_p2), %s269_s7, 2  ;;  %p188_p4 = scmp.ne.s32.totalorder (!%p84_p2), %s269_s7, 0 }
   0x6   : > { %87 = sbr.rel (%p84_p2) target bundleno = 270 (0x10e), region = 24 }
   0xd   : > { %s99_s8 = scalar_select %p98_p3, %s269_s7, 2 }
   0xe   : > { %106 = sbr.rel (%p188_p4) target bundleno = 21 (0x15), region = 28  ;;  %vm107_vm0 = vcmask (!%p188_p4), 0   ;;  %v251_v0 = vmov (!%p188_p4), 0.0  }
   0xf   : > { %s194_s9 = sshll.u32 %s99_s8, 3  ;;  %108 = vst.msk [vmem:[#allocation2] sm:$0x1] (!%p188_p4), %vm107_vm0, %v251_v0 }
  0x10   : > { %s102_s12 = scalar_lea.vmem %s306_s0, %s194_s9 }
  0x15 PF: > { %v109_v1 = vld [vmem:[%s102_s12] sm:$0xff]  ;;  %vm113_vm1 = vcmask 154624   ;;  %vm128_vm2 = vcmask 0   ;;  %p189_p5 = scmp.ne.s32.totalorder %s269_s7, 2 }
  0x16   : > { %v110_v2 = vand.u32 2147450879, %v109_v1  ;;  %v126_v14 = vld [vmem:[#allocation2] sm:$0x1] }
  0x18   : > { %v111_v3 = vunpack.c.l.bf16 %v110_v2  ;;  %v112_v4 = vunpack.c.h.bf16 %v110_v2 }
  0x1a   : > { %v114_v5 = vsel %vm113_vm1, %v112_v4, -inf }
  0x1b   : > { %v115_v6 = vmax.f32 %v111_v3, %v114_v5 }
  0x1d   : > { %116 = vmax.xlane.f32.xlu0 %v115_v6 }
  0xaa   : > { %v117_v7 = vpop.xlane.xlu0 %116 }
  0xab   : > { %v118_v8 = vrot.slane %v117_v7, 4 }
  0xad   : > { %v119_v9 = vmax.f32 %v117_v7, %v118_v8 }
  0xaf   : > { %v120_v10 = vrot.slane %v119_v9, 2 }
  0xb1   : > { %v121_v11 = vmax.f32 %v119_v9, %v120_v10 }
  0xb3   : > { %v122_v12 = vrot.slane %v121_v11, 1 }
  0xb5   : > { %v123_v13 = vmax.f32 %v121_v11, %v122_v12 }
  0xb7   : > { %195 = vpush %v123_v13 }
  0xe6   : > { %133 = sbr.rel (%p189_p5) target bundleno = 245 (0xf5), region = 32 }
  0xe8   : > { %s196_s13 = spop %195 }
  0xe9   : > { %v125_v15 = vstv %s196_s13 }
  0xea   : > { %v127_v16 = vmax.f32 %v126_v14, %v125_v15 }
  0xec   : > { %129 = vst.msk [vmem:[#allocation2] sm:$0x1] %vm128_vm2, %v127_v16 }
  0xf3   : > { %v134_v17 = vld [vmem:[#allocation2] sm:$0x1] }
  0xf4   : > { %135 = vst.msk [vmem:[#allocation3] sm:$0x1] %vm128_vm2, %v134_v17 }
  0xf5 PF: > { %p201_p6 = scmp.eq.s32.totalorder %s269_s7, 2  ;;  %s252_s14 = smov [#allocation3]  }
  0xf6   : > { %s143_s15 = sshll.u32 %s252_s14, 4  ;;  %s144_s15 = int_to_ptr.vmem [resolvable:$true] %s143_s15 }
  0xf7   : > { %s213_s16 = scalar_lea.vmem %s144_s15, 16  ;;  %s219_s17 = scalar_lea.vmem %s144_s15, 32 }
  0xf8   : > { %p214_p7 = scmp.ne.s32.totalorder %s144_s15, %s213_s16  ;;  %p220_p10 = scmp.lt.s32.totalorder %s144_s15, %s144_s15 }
  0xf9   : > { %p221_p11 = scmp.lt.s32.totalorder %s219_s17, %s213_s16 }
  0xfa   : > { %p215_p8 = pnand %p214_p7, %p201_p6 }
  0xfb   : > { %p222_p12 = por %p221_p11, %p220_p10 }
  0xfc   : > { %p216_p9 = pneg %p215_p8 }
  0xfe   : > { %p223_p13 = pnand %p222_p12, %p216_p9 }
 0x100   : > { %226 = shalt.err (!%p223_p13)
}
 0x101   : > { %s227_s20 = scalar_lea.hbm %s307_s1, 16 }
 0x102   : > { %p228_p0 = scmp.ne.s32.totalorder %s307_s1, %s227_s20  ;;  %p233_p3 = scmp.lt.u32.totalorder %s227_s20, %s307_s1 }
 0x104   : > { %p229_p1 = pnand %p228_p0, %p201_p6 }
 0x106   : > { %p230_p2 = pneg %p229_p1 }
 0x108   : > { %p235_p4 = pnand %p233_p3, %p230_p2 }
 0x10a   : > { %238 = shalt.err (!%p235_p4)
}
 0x10b   : > { %198 = dma.vmem_to_hbm [thread:$0]  (%p201_p6), %s144_s15, 16, %s307_s1, [#allocation4]  }
 0x10c   : > { %244 = dma.done.wait (%p201_p6), [#allocation4], 16  }
 0x10d   : > { %246 = vsyncadd (%p201_p6), [#allocation4], 4294967280 }
 0x10e PF: > { %s12_s6 = sadd.s32 1, %s249_s6  }
 0x10f   : > { %p9_p5 = scmp.ge.s32.totalorder %s12_s6, 5  }
 0x111   :  { %11 = sbr.rel (!%p9_p5) target bundleno = 1 (0x1), region = 59 }
 0x118   :  { %156 = vsyncpa [#allocation4], 1 }
 0x119   :  { %158 = vsyncpa [#allocation4 + $0x1], 1 }

// kernel: _forward_impl.4
= control target key start
LH: loop header
LB: loop body
LE: loop exit
PB: predicated region body
PF: predicated region fallthrough
CT: control target
= control target key end

     0   :  { %s1078_s0 = inlined_call_operand.<no memory space> [shape: f32[1,1], index: 0, kind: input, shape index: {}]   ;;  %s1079_s1 = inlined_call_operand.vmem [shape: bf16[24,147], index: 1, kind: input, shape index: {}]   ;;  %s1080_s2 = inlined_call_operand.vmem [shape: bf16[16,14], index: 2, kind: input, shape index: {}]   ;;  %s1081_s3 = inlined_call_operand.hbm [shape: bf16[147,384], index: 3, kind: input, shape index: {}]   ;;  %s1082_s4 = inlined_call_operand.vmem [shape: bf16[14,384], index: 4, kind: input, shape index: {}]   ;;  %s1083_s5 = inlined_call_operand.vmem [shape: bf16[16,384], index: 5, kind: output, shape index: {}]  }
   0x1   :  { %10 = sst [smem:[#allocation2]] %s1078_s0 }
   0x2   :  { %11 = vsyncpa [#allocation4], 0  ;;  %s991_s20 = smov 0  }
   0x3 LB: > { %s997_s21 = sadd.s32 4294967295, %s949_s20   ;;  %p768_p0 = scmp.ge.s32.totalorder %s949_s20, 1  ;;  %s949_s20 = sphi %s991_s20, %s17_s20  }
   0x4   : > { %p163_p1 = scmp.lt.s32.totalorder %s949_s20, 3  ;;  %s951_s22 = smov [#allocation3]  }
   0x5   : > { %s178_s23 = sshll.u32 %s951_s22, 4  ;;  %p1084_p3 = scmp.eq.s32.totalorder %s997_s21, 0  ;;  %s179_s23 = int_to_ptr.vmem [resolvable:$true] %s178_s23 }
   0x6   : > { %p1001_p2 = pnand %p768_p0, %p163_p1  ;;  %s911_s27 = scalar_lea.hbm %s1081_s3, 3648 }
   0x7   : > { %p912_p6 = scmp.ne.s32.totalorder %s1081_s3, %s911_s27  ;;  %p918_p10 = scmp.lt.u32.totalorder %s911_s27, %s1081_s3 }
   0x8   : > { %s1086_s0 = scalar_select %p1001_p2, 1, 0 }
   0x9   : > { %p845_p4 = pneg %p1001_p2 }
   0xb   : > { %p1010_p5 = pnand %p1084_p3, %p845_p4 }
   0xd   : > { %p913_p7 = pneg %p1010_p5 }
   0xf   : > { %p914_p8 = pnand %p913_p7, %p912_p6 }
  0x11   : > { %p915_p9 = pneg %p914_p8 }
  0x13   : > { %p920_p11 = pnand %p918_p10, %p915_p9 }
  0x15   : > { %923 = shalt.err (!%p920_p11)
}
  0x16   : > { %s924_s7 = scalar_lea.vmem %s179_s23, 3648  ;;  %p932_p1 = scmp.lt.s32.totalorder %s179_s23, %s179_s23 }
  0x17   : > { %p925_p12 = scmp.ne.s32.totalorder %s179_s23, %s924_s7  ;;  %p933_p4 = scmp.lt.s32.totalorder %s924_s7, %s924_s7 }
  0x19   : > { %p927_p13 = pnand %p925_p12, %p913_p7  ;;  %p934_p3 = por %p933_p4, %p932_p1 }
  0x1b   : > { %p928_p0 = pneg %p927_p13 }
  0x1d   : > { %p935_p2 = pnand %p934_p3, %p928_p0 }
  0x1f   : > { %938 = shalt.err (!%p935_p2)
}
  0x20   : > { %s952_s8 = smov 192   ;;  %s953_s9 = smov 12  }
  0x21   : > { %848 = dma.hbm_to_vmem [thread:$0]  (!%p1010_p5), %s1081_s3, 3648, %s179_s23, [#allocation4], %s952_s8, %s952_s8, %s953_s9  }
  0x22   : > { %p1088_p6 = scmp.ne.s32.totalorder %s1086_s0, 0 }
  0x23   : > { %p1089_p8 = scmp.eq.s32.totalorder (!%p1088_p6), %s997_s21, 0 }
  0x24   : > { %212 = sbr.rel (%p1088_p6) target bundleno = 309 (0x135), region = 40 }
  0x2b   : > { %944 = dma.done.wait (%p1089_p8), [#allocation4], 3648   ;;  %p1090_p7 = pmov %p1089_p8 }
  0x2c   : > { %v954_v0 = vmov 0.0   ;;  %v955_v1 = vmov 0   ;;  %p249_p2 = scmp.lt.s32.totalorder %s997_s21, 1  ;;  %vm956_vm0 = vmmov 0   ;;  %vm320_vm1 = vcmask 1046528   ;;  %p244_p3 = scmp.lt.s32.totalorder %s997_s21, 2 }
  0x2d   : > { %946 = vsyncadd (%p1090_p7), [#allocation4], 4294963648  ;;  %826 = vmatprep.subr.bf16.mxu1 %v954_v0  ;;  %362 = vmatprep.mubr.bf16.mxu0 %v955_v1  ;;  %vm316_vm2 = vcmask 113664   ;;  %v866_v2 = vld [vmem:[%s1082_s4 + $0x4] ss:$12 sps:$4 sm:$0x7f]  }
  0x2e   : > { %828 = vmatprep.mubr.msk.bf16.mxu1 %vm956_vm0, %v954_v0  ;;  %s1039_s12 = scalar_select %p249_p2, %s997_s21, 1  ;;  %v868_v3 = vld [vmem:[%s1082_s4] ss:$12 sps:$4 sm:$0x7f]   ;;  %780 = vmatprep.subr.msk.bf16.mxu0 %vm320_vm1, %v866_v2  ;;  %v872_v7 = vld [vmem:[#allocation3 + $0x4] ss:$12 sps:$4 sm:$0xff]  }
  0x2f   : > { %v869_v4 = vld [vmem:[%s1082_s4 + $0x8] ss:$12 sps:$4 sm:$0x7f]   ;;  %v322_v5 = vsel %vm320_vm1, %v868_v3, 0  ;;  %v870_v6 = vld [vmem:[#allocation3] ss:$12 sps:$4 sm:$0xff]  }
  0x30   : > { %s775_s13 = sshll.u32 %s1039_s12, 2  ;;  %331 = vmatpush1.bf16.msra.mxu0 %v322_v5  ;;  %v328_v8 = vsel %vm320_vm1, %v869_v4, 0  ;;  %v873_v10 = vld [vmem:[#allocation3 + $0x8] ss:$12 sps:$4 sm:$0xff]   ;;  %v874_v12 = vld [vmem:[#allocation3 + $0x18] ss:$12 sps:$4 sm:$0xff]  }
  0x31   : > { %s252_s22 = scalar_lea.vmem %s1080_s2, %s775_s13  ;;  %827 = vmatpush3.bf16.msra.mxu1 %v328_v8  ;;  %586 = vmatprep.subr.bf16.mxu0 %v872_v7  ;;  %v876_v11 = vld [vmem:[#allocation3 + $0x1c] ss:$12 sps:$4 sm:$0xff]   ;;  %v877_v13 = vld [vmem:[#allocation3 + $0x20] ss:$12 sps:$4 sm:$0xff]   ;;  %v881_v16 = vld [vmem:[#allocation3 + $0x38] ss:$12 sps:$4 sm:$0xff]  }
  0x32   : > { %v298_v9 = vld [vmem:[%s252_s22] sm:$0xf]  ;;  %627 = vmatprep.subr.bf16.mxu1 %v955_v1  ;;  %v878_v15 = vld [vmem:[#allocation3 + $0x30] ss:$12 sps:$4 sm:$0xff]   ;;  %v884_v17 = vld [vmem:[#allocation3 + $0x4c] ss:$12 sps:$4 sm:$0xff]  }
  0x33   : > { %781 = vmatmul.mubr.msk.bf16.vlgmr.msra.gmra.mrb[0].mxu0 %vm316_vm2, %v298_v9  ;;  %v880_v14 = vld [vmem:[#allocation3 + $0x34] ss:$12 sps:$4 sm:$0xff]   ;;  %s1092_s21 = smov (!%p244_p3, %s997_s21), 2  ;;  %v885_v19 = vld [vmem:[#allocation3 + $0x50] ss:$12 sps:$4 sm:$0xff]   ;;  %vm569_vm3 = vcmask 154624  }
  0x34   : > { %829 = vmatmul.mubr.msk.bf16.vlgmr.msra.gmra.mrb[0].mxu1 %vm316_vm2, %v298_v9  ;;  %587 = vmatpush1.bf16.msra.mxu0 %v870_v6  ;;  %v882_v18 = vld [vmem:[#allocation3 + $0x48] ss:$12 sps:$4 sm:$0xff]   ;;  %v888_v20 = vld [vmem:[#allocation3 + $0x64] ss:$12 sps:$4 sm:$0xff]   ;;  %s821_s24 = sshll.u32 %s1092_s21, 3  ;;  %vm573_vm4 = vcmask 1040384  }
  0x35   : > { %628 = vmatpush1.bf16.msra.mxu1 %v873_v10  ;;  %588 = vmatprep.subr.bf16.mxu0 %v876_v11  ;;  %v886_v21 = vld [vmem:[#allocation3 + $0x60] ss:$12 sps:$4 sm:$0xff]   ;;  %v889_v22 = vld [vmem:[#allocation3 + $0x68] ss:$12 sps:$4 sm:$0xff]   ;;  %s248_s27 = scalar_lea.vmem %s1079_s1, %s821_s24  ;;  %v890_v24 = vld [vmem:[#allocation3 + $0x78] ss:$12 sps:$4 sm:$0xff]  }
  0x36   : > { %629 = vmatprep.subr.bf16.mxu1 %v955_v1  ;;  %v892_v23 = vld [vmem:[#allocation3 + $0x7c] ss:$12 sps:$4 sm:$0xff]   ;;  %v259_v25 = vld [vmem:[%s248_s27] sm:$0xff]  ;;  %v900_v31 = vld [vmem:[#allocation3 + $0xac] ss:$12 sps:$4 sm:$0xff]   ;;  %vm574_vm5 = vcmask 1041408  }
  0x37   : > { %v893_v26 = vld [vmem:[#allocation3 + $0x80] ss:$12 sps:$4 sm:$0xff]   ;;  %v784_v28 = vcombine.high %v259_v25, %v259_v25  ;;  %v894_v29 = vld [vmem:[#allocation3 + $0x90] ss:$12 sps:$4 sm:$0xff]   ;;  %v897_v30 = vld [vmem:[#allocation3 + $0x98] ss:$12 sps:$4 sm:$0xff]   ;;  %v783_v47 = vcombine.low %v259_v25, %v259_v25 }
  0x38   : > { %589 = vmatpush1.bf16.msra.mxu0 %v874_v12  ;;  %v896_v27 = vld [vmem:[#allocation3 + $0x94] ss:$12 sps:$4 sm:$0xff]   ;;  %v296_v32 = vld [vmem:[#allocation3 + $0xd8] sm:$0x33]  ;;  %v957_v33 = vmov 65535   ;;  %s667_s21 = sld [smem:[#allocation2]] }
  0x39   : > { %630 = vmatpush1.bf16.msra.mxu1 %v877_v13  ;;  %590 = vmatprep.subr.bf16.mxu0 %v880_v14  ;;  %v575_v34 = vsel %vm573_vm4, 4294967295, %v957_v33  ;;  %v898_v35 = vld [vmem:[#allocation3 + $0xa8] ss:$12 sps:$4 sm:$0xff]   ;;  %v901_v36 = vld [vmem:[#allocation3 + $0xb0] ss:$12 sps:$4 sm:$0xff]   ;;  %v813_v38 = vcombine.high %v296_v32, %v296_v32  ;;  %v812_v41 = vcombine.low %v296_v32, %v296_v32  ;;  %s840_s28 = smul.u32 12, %s1039_s12 }
  0x3a   : > { %631 = vmatprep.subr.bf16.mxu1 %v955_v1  ;;  %815 = vmatprep.mubr.msk.bf16.mxu0 %vm569_vm3, %v784_v28  ;;  %v904_v37 = vld [vmem:[#allocation3 + $0xc4] ss:$12 sps:$4 sm:$0xff]   ;;  %v576_v39 = vsel %vm574_vm5, %v575_v34, 0  ;;  %v902_v40 = vld [vmem:[#allocation3 + $0xc0] ss:$12 sps:$4 sm:$0xff]  }
  0x3b   : > { %816 = vmatprep.mubr.msk.bf16.mxu1 %vm569_vm3, %v784_v28  ;;  %v905_v42 = vld [vmem:[#allocation3 + $0xc8] ss:$12 sps:$4 sm:$0xff]   ;;  %v581_v43 = vand.u32 %v813_v38, %v576_v39  ;;  %v908_v44 = vld [vmem:[#allocation3 + $0xe0] ss:$0 sps:$4 sm:$0x33]   ;;  %v578_v45 = vand.u32 %v812_v41, %v576_v39  ;;  %s257_s6 = scalar_lea.vmem %s1083_s5, %s840_s28 }
  0x3c   : > { %591 = vmatpush1.bf16.msra.mxu0 %v878_v15  ;;  %v584_v46 = vand.u32 %v908_v44, %v576_v39 }
  0x3d   : > { %632 = vmatpush1.bf16.msra.mxu1 %v881_v16  ;;  %592 = vmatprep.subr.bf16.mxu0 %v884_v17 }
  0x3e   : > { %633 = vmatprep.subr.bf16.mxu1 %v955_v1  ;;  %v668_v48 = vstv %s667_s21 }
  0x40   : > { %593 = vmatpush1.bf16.msra.mxu0 %v882_v18 }
  0x41   : > { %634 = vmatpush1.bf16.msra.mxu1 %v885_v19  ;;  %594 = vmatprep.subr.bf16.mxu0 %v888_v20 }
  0x42   : > { %635 = vmatprep.subr.bf16.mxu1 %v955_v1 }
  0x44   : > { %595 = vmatpush1.bf16.msra.mxu0 %v886_v21 }
  0x45   : > { %636 = vmatpush1.bf16.msra.mxu1 %v889_v22  ;;  %596 = vmatprep.subr.bf16.mxu0 %v892_v23 }
  0x46   : > { %637 = vmatprep.subr.bf16.mxu1 %v955_v1 }
  0x48   : > { %597 = vmatpush1.bf16.msra.mxu0 %v890_v24 }
  0x49   : > { %638 = vmatpush1.bf16.msra.mxu1 %v893_v26  ;;  %598 = vmatprep.subr.bf16.mxu0 %v896_v27 }
  0x4a   : > { %639 = vmatprep.subr.bf16.mxu1 %v955_v1 }
  0x4c   : > { %599 = vmatpush1.bf16.msra.mxu0 %v894_v29 }
  0x4d   : > { %640 = vmatpush1.bf16.msra.mxu1 %v897_v30  ;;  %600 = vmatprep.subr.bf16.mxu0 %v900_v31 }
  0x4e   : > { %641 = vmatprep.subr.bf16.mxu1 %v955_v1 }
  0x50   : > { %601 = vmatpush1.bf16.msra.mxu0 %v898_v35 }
  0x51   : > { %642 = vmatpush1.bf16.msra.mxu1 %v901_v36  ;;  %602 = vmatprep.subr.bf16.mxu0 %v904_v37 }
  0x52   : > { %643 = vmatprep.subr.bf16.mxu1 %v955_v1 }
  0x54   : > { %603 = vmatpush1.bf16.msra.mxu0 %v902_v40 }
  0x55   : > { %644 = vmatpush1.bf16.msra.mxu1 %v905_v42  ;;  %604 = vmatprep.subr.bf16.mxu0 %v581_v43 }
  0x56   : > { %645 = vmatprep.subr.bf16.mxu1 %v955_v1 }
  0x58   : > { %605 = vmatpush1.bf16.msra.mxu0 %v578_v45 }
  0x59   : > { %646 = vmatpush1.bf16.msra.mxu1 %v584_v46 }
  0x5b   : > { %619 = vmatmul.mubr.bf16.vlgmr.msra.gmra.mrb[0].mxu0 %v783_v47 }
  0x5c   : > { %660 = vmatmul.mubr.bf16.vlgmr.msra.gmra.mrb[0].mxu1 %v783_v47 }
 0x12e   : > { %v620_v49 = vpop.f32.mrb[0].mxu0 }
 0x12f   : > { %v669_v50 = vmul.f32 %v668_v48, %v620_v49  ;;  %v661_v51 = vpop.f32.mrb[0].mxu1  ;;  %v622_v52 = vpop.f32.mrb[1].mxu0 }
 0x130   : > { %v671_v53 = vmul.f32 %v668_v48, %v661_v51  ;;  %v670_v54 = vmul.f32 %v668_v48, %v622_v52  ;;  %v663_v55 = vpop.f32.mrb[1].mxu1  ;;  %v624_v56 = vpop.f32.mrb[2].mxu0 }
 0x131   : > { %v664_v57 = vpop.f32.mrb[2].mxu1  ;;  %v625_v58 = vpop.f32.mrb[3].mxu0 }
 0x132   : > { %v823_v59 = vpack.c.bf16 %v671_v53, %v671_v53  ;;  %v822_v60 = vpack.c.bf16 %v670_v54, %v669_v50  ;;  %v665_v61 = vpop.f32.mrb[3].mxu1 }
 0x134   : > { %686 = vst [vmem:[%s257_s6 + $0x8] sm:$0xf] %v823_v59  ;;  %685 = vst [vmem:[%s257_s6] sm:$0xff] %v822_v60 }
 0x135 PF: > { %s17_s20 = sadd.s32 1, %s949_s20  }
 0x136   : > { %p14_p5 = scmp.ge.s32.totalorder %s17_s20, 4  }
 0x138   :  { %16 = sbr.rel (!%p14_p5) target bundleno = 3 (0x3), region = 78 }
 0x13f   :  { %708 = vsyncpa [#allocation4], 1 }
 0x140   :  { %710 = vsyncpa [#allocation4 + $0x1], 1 }

// kernel: _forward_impl.5
= control target key start
LH: loop header
LB: loop body
LE: loop exit
PB: predicated region body
PF: predicated region fallthrough
CT: control target
= control target key end

     0   :  { %s917_s20 = smov 0   ;;  %s1079_s0 = inlined_call_operand.<no memory space> [shape: f32[1,1], index: 0, kind: input, shape index: {}]   ;;  %s1080_s1 = inlined_call_operand.vmem [shape: bf16[24,320], index: 1, kind: input, shape index: {}]   ;;  %s1081_s2 = inlined_call_operand.vmem [shape: bf16[16,28], index: 2, kind: input, shape index: {}]   ;;  %s1082_s3 = inlined_call_operand.vmem [shape: bf16[320,256], index: 3, kind: input, shape index: {}]   ;;  %s1083_s4 = inlined_call_operand.vmem [shape: bf16[28,256], index: 4, kind: input, shape index: {}]   ;;  %s1084_s5 = inlined_call_operand.vmem [shape: f32[16,256], index: 5, kind: output, shape index: {}]  }
   0x1   :  { %10 = sst [smem:[#allocation2]] %s1079_s0 }
   0x2 LB: > { %s923_s21 = sadd.s32 4294967295, %s881_s20   ;;  %p734_p0 = scmp.ge.s32.totalorder %s881_s20, 1  ;;  %s881_s20 = sphi %s917_s20, %s16_s20  }
   0x3   : > { %p197_p1 = scmp.lt.s32.totalorder %s881_s20, 3 }
   0x5   : > { %p198_p2 = pnand %p734_p0, %p197_p1 }
   0x6   : > { %v806_v0 = vld [vmem:[%s1082_s3 + $0x4] ss:$8 sps:$4 sm:$0xff] (!%p198_p2)   ;;  %v808_v1 = vld [vmem:[%s1082_s3] ss:$8 sps:$4 sm:$0xff] (!%p198_p2)   ;;  %v883_v2 = vmov (!%p198_p2), 0   ;;  %p234_p3 = scmp.lt.s32.totalorder (!%p198_p2), %s923_s21, 1 }
   0x7   : > { %201 = sbr.rel (%p198_p2) target bundleno = 291 (0x123), region = 40  ;;  %352 = vmatprep.mubr.bf16.mxu0 (!%p198_p2), %v883_v2  ;;  %575 = vmatprep.subr.bf16.mxu1 (!%p198_p2), %v806_v0  ;;  %v809_v3 = vld [vmem:[%s1082_s3 + $0x14] ss:$8 sps:$4 sm:$0xff] (!%p198_p2)   ;;  %v811_v4 = vld [vmem:[%s1082_s3 + $0x10] ss:$8 sps:$4 sm:$0xff] (!%p198_p2)   ;;  %p229_p4 = scmp.lt.s32.totalorder (!%p198_p2), %s923_s21, 2 }
   0x8   : > { %576 = vmatpush1.bf16.msra.mxu1 (!%p198_p2), %v808_v1  ;;  %v812_v5 = vld [vmem:[%s1082_s3 + $0x24] ss:$8 sps:$4 sm:$0xff] (!%p198_p2)   ;;  %v814_v6 = vld [vmem:[%s1082_s3 + $0x20] ss:$8 sps:$4 sm:$0xff] (!%p198_p2)   ;;  %v815_v7 = vld [vmem:[%s1082_s3 + $0x34] ss:$8 sps:$4 sm:$0xff] (!%p198_p2)  }
   0x9   : > { %577 = vmatprep.subr.bf16.mxu1 (!%p198_p2), %v809_v3  ;;  %v817_v8 = vld [vmem:[%s1082_s3 + $0x30] ss:$8 sps:$4 sm:$0xff] (!%p198_p2)   ;;  %v818_v9 = vld [vmem:[%s1082_s3 + $0x44] ss:$8 sps:$4 sm:$0xff] (!%p198_p2)   ;;  %v838_v11 = vld [vmem:[%s1083_s4] ss:$8 sps:$4 sm:$0xff] (!%p198_p2)  }
   0xa   : > { %v836_v10 = vld [vmem:[%s1083_s4 + $0x4] ss:$8 sps:$4 sm:$0xff] (!%p198_p2)   ;;  %vm313_vm0 = vcmask (!%p198_p2), 1045504   ;;  %v820_v12 = vld [vmem:[%s1082_s3 + $0x40] ss:$8 sps:$4 sm:$0xff] (!%p198_p2)   ;;  %vm309_vm1 = vcmask (!%p198_p2), 228352  }
   0xb   : > { %v821_v13 = vld [vmem:[%s1082_s3 + $0x54] ss:$8 sps:$4 sm:$0xff] (!%p198_p2)   ;;  %320 = vmatprep.subr.bf16.mxu0 (!%p198_p2), %v836_v10  ;;  %v844_v15 = vld [vmem:[%s1083_s4 + $0x10] ss:$8 sps:$4 sm:$0x3f] (!%p198_p2)   ;;  %vm571_vm2 = vcmask (!%p198_p2), 523264  }
   0xc   : > { %578 = vmatpush1.bf16.msra.mxu1 (!%p198_p2), %v811_v4  ;;  %v842_v14 = vld [vmem:[%s1083_s4 + $0x14] ss:$8 sps:$4 sm:$0x3f] (!%p198_p2)   ;;  %321 = vmatpush1.bf16.msra.mxu0 (!%p198_p2), %v838_v11  ;;  %v823_v16 = vld [vmem:[%s1082_s3 + $0x50] ss:$8 sps:$4 sm:$0xff] (!%p198_p2)   ;;  %v315_v17 = vsel (!%p198_p2), %vm313_vm0, %v844_v15, 0 }
   0xd   : > { %579 = vmatprep.subr.bf16.mxu1 (!%p198_p2), %v812_v5  ;;  %743 = vmatprep.subr.msk.bf16.mxu0 (!%p198_p2), %vm313_vm0, %v842_v14  ;;  %v850_v18 = vld [vmem:[%s1082_s3 + $0x104] ss:$8 sps:$4 sm:$0xff] (!%p198_p2)   ;;  %v848_v20 = vld [vmem:[%s1082_s3 + $0x100] ss:$8 sps:$4 sm:$0xff] (!%p198_p2)   ;;  %v856_v22 = vld [vmem:[%s1082_s3 + $0x114] ss:$8 sps:$4 sm:$0xff] (!%p198_p2)  }
   0xe   : > { %s953_s12 = scalar_select %p234_p3, %s923_s21, 1  ;;  %v824_v19 = vld [vmem:[%s1082_s3 + $0x64] ss:$8 sps:$4 sm:$0xff]   ;;  %v826_v23 = vld [vmem:[%s1082_s3 + $0x60] ss:$8 sps:$4 sm:$0xff]  }
   0xf   : > { %s1086_s21 = smov (!%p229_p4, %s923_s21), 2  ;;  %v827_v24 = vld [vmem:[%s1082_s3 + $0x74] ss:$8 sps:$4 sm:$0xff]   ;;  %v854_v25 = vld [vmem:[%s1082_s3 + $0x110] ss:$8 sps:$4 sm:$0xff]   ;;  %s657_s0 = sld [smem:[#allocation2]] }
  0x10   : > { %580 = vmatpush1.bf16.msra.mxu1 %v814_v6  ;;  %s736_s24 = sshll.u32 %s953_s12, 2  ;;  %323 = vmatpush1.bf16.msra.mxu0 %v315_v17  ;;  %s796_s18 = smul.u32 12, %s1086_s21  ;;  %v862_v26 = vld [vmem:[%s1082_s3 + $0x124] ss:$8 sps:$4 sm:$0xff]   ;;  %v829_v27 = vld [vmem:[%s1082_s3 + $0x70] ss:$8 sps:$4 sm:$0xff]  }
  0x11   : > { %581 = vmatprep.subr.bf16.mxu1 %v815_v7  ;;  %s237_s6 = scalar_lea.vmem %s1081_s2, %s736_s24  ;;  %616 = vmatprep.subr.bf16.mxu0 %v850_v18  ;;  %v830_v28 = vld [vmem:[%s1082_s3 + $0x84] ss:$8 sps:$4 sm:$0xff]   ;;  %v860_v29 = vld [vmem:[%s1082_s3 + $0x120] ss:$8 sps:$4 sm:$0xff]   ;;  %v868_v31 = vld [vmem:[%s1082_s3 + $0x134] ss:$8 sps:$4 sm:$0xff]  }
  0x12   : > { %v286_v21 = vld [vmem:[%s237_s6] sm:$0xf]  ;;  %s233_s29 = scalar_lea.vmem %s1080_s1, %s796_s18  ;;  %v833_v34 = vld [vmem:[%s1082_s3 + $0x94] ss:$8 sps:$4 sm:$0xff]   ;;  %v866_v35 = vld [vmem:[%s1082_s3 + $0x130] ss:$8 sps:$4 sm:$0xff]  }
  0x13   : > { %744 = vmatmul.mubr.msk.bf16.vlgmr.msra.gmra.mrb[0].mxu0 %vm309_vm1, %v286_v21  ;;  %v244_v30 = vld [vmem:[%s233_s29] sm:$0xff]  ;;  %v835_v36 = vld [vmem:[%s1082_s3 + $0x90] ss:$8 sps:$4 sm:$0xff]   ;;  %v874_v38 = vld [vmem:[%s233_s29 + $0x8] ss:$0 sps:$4 sm:$0xff]   ;;  %s791_s24 = sshll.u32 %s953_s12, 4 }
  0x14   : > { %582 = vmatpush1.bf16.msra.mxu1 %v817_v8  ;;  %617 = vmatpush1.bf16.msra.mxu0 %v848_v20  ;;  %v746_v32 = vcombine.high %v244_v30, %v244_v30  ;;  %v832_v33 = vld [vmem:[%s1082_s3 + $0x80] ss:$8 sps:$4 sm:$0xff]   ;;  %v839_v37 = vld [vmem:[%s1082_s3 + $0xa4] ss:$8 sps:$4 sm:$0xff]   ;;  %v845_v40 = vld [vmem:[%s1082_s3 + $0xb4] ss:$8 sps:$4 sm:$0xff]   ;;  %v745_v50 = vcombine.low %v244_v30, %v244_v30  ;;  %s242_s21 = scalar_lea.vmem %s1084_s5, %s791_s24 }
  0x15   : > { %583 = vmatprep.subr.bf16.mxu1 %v818_v9  ;;  %648 = vmatprep.mubr.bf16.mxu0 %v883_v2  ;;  %v841_v39 = vld [vmem:[%s1082_s3 + $0xa0] ss:$8 sps:$4 sm:$0xff]   ;;  %v847_v41 = vld [vmem:[%s1082_s3 + $0xb0] ss:$8 sps:$4 sm:$0xff]   ;;  %v851_v42 = vld [vmem:[%s1082_s3 + $0xc4] ss:$8 sps:$4 sm:$0xff]   ;;  %v658_v62 = vstv %s657_s0 }
  0x16   : > { %618 = vmatprep.subr.bf16.mxu0 %v856_v22  ;;  %607 = vmatprep.mubr.bf16.mxu1 %v746_v32  ;;  %v853_v43 = vld [vmem:[%s1082_s3 + $0xc0] ss:$8 sps:$4 sm:$0xff]   ;;  %v857_v44 = vld [vmem:[%s1082_s3 + $0xd4] ss:$8 sps:$4 sm:$0xff]   ;;  %v859_v45 = vld [vmem:[%s1082_s3 + $0xd0] ss:$8 sps:$4 sm:$0xff]  }
  0x17   : > { %v863_v46 = vld [vmem:[%s1082_s3 + $0xe4] ss:$8 sps:$4 sm:$0xff]   ;;  %v865_v47 = vld [vmem:[%s1082_s3 + $0xe0] ss:$8 sps:$4 sm:$0xff]   ;;  %v869_v48 = vld [vmem:[%s1082_s3 + $0xf4] ss:$8 sps:$4 sm:$0xff]  }
  0x18   : > { %584 = vmatpush1.bf16.msra.mxu1 %v820_v12  ;;  %619 = vmatpush1.bf16.msra.mxu0 %v854_v25  ;;  %v871_v49 = vld [vmem:[%s1082_s3 + $0xf0] ss:$8 sps:$4 sm:$0xff]  }
  0x19   : > { %585 = vmatprep.subr.bf16.mxu1 %v821_v13  ;;  %620 = vmatprep.subr.bf16.mxu0 %v862_v26 }
  0x1c   : > { %586 = vmatpush1.bf16.msra.mxu1 %v823_v16  ;;  %621 = vmatpush1.bf16.msra.mxu0 %v860_v29 }
  0x1d   : > { %587 = vmatprep.subr.bf16.mxu1 %v824_v19  ;;  %622 = vmatprep.subr.bf16.mxu0 %v868_v31 }
  0x20   : > { %588 = vmatpush1.bf16.msra.mxu1 %v826_v23  ;;  %623 = vmatpush1.bf16.msra.mxu0 %v866_v35 }
  0x21   : > { %589 = vmatprep.subr.bf16.mxu1 %v827_v24 }
  0x23   : > { %788 = vmatmul.mubr.msk.bf16.vlgmr.msra.gmra.mrb[4].mxu0 %vm571_vm2, %v874_v38 }
  0x24   : > { %590 = vmatpush1.bf16.msra.mxu1 %v829_v27 }
  0x25   : > { %591 = vmatprep.subr.bf16.mxu1 %v830_v28 }
  0x28   : > { %592 = vmatpush1.bf16.msra.mxu1 %v832_v33 }
  0x29   : > { %593 = vmatprep.subr.bf16.mxu1 %v833_v34 }
  0x2c   : > { %594 = vmatpush1.bf16.msra.mxu1 %v835_v36 }
  0x2d   : > { %595 = vmatprep.subr.bf16.mxu1 %v839_v37 }
  0x30   : > { %596 = vmatpush1.bf16.msra.mxu1 %v841_v39 }
  0x31   : > { %597 = vmatprep.subr.bf16.mxu1 %v845_v40 }
  0x34   : > { %598 = vmatpush1.bf16.msra.mxu1 %v847_v41 }
  0x35   : > { %599 = vmatprep.subr.bf16.mxu1 %v851_v42 }
  0x38   : > { %600 = vmatpush1.bf16.msra.mxu1 %v853_v43 }
  0x39   : > { %601 = vmatprep.subr.bf16.mxu1 %v857_v44 }
  0x3c   : > { %602 = vmatpush1.bf16.msra.mxu1 %v859_v45 }
  0x3d   : > { %603 = vmatprep.subr.bf16.mxu1 %v863_v46 }
  0x40   : > { %604 = vmatpush1.bf16.msra.mxu1 %v865_v47 }
  0x41   : > { %605 = vmatprep.subr.bf16.mxu1 %v869_v48 }
  0x44   : > { %606 = vmatpush1.bf16.msra.mxu1 %v871_v49 }
  0x47   : > { %608 = vmatmul.mubr.bf16.vlgmr.msra.gmra.mrb[0].mxu1 %v745_v50 }
  0xe6   : > { %v354_v51 = vpop.f32.mrb[0].mxu0 }
  0xe7   : > { %v356_v52 = vpop.f32.mrb[1].mxu0 }
  0xe8   : > { %v358_v53 = vpop.f32.mrb[2].mxu0 }
  0xe9   : > { %v359_v54 = vpop.f32.mrb[3].mxu0 }
  0xf6   : > { %v650_v55 = vpop.f32.mrb[4].mxu0 }
  0xf7   : > { %v652_v56 = vpop.f32.mrb[5].mxu0 }
  0xf8   : > { %v654_v57 = vpop.f32.mrb[6].mxu0 }
  0xf9   : > { %v655_v58 = vpop.f32.mrb[7].mxu0 }
 0x11a   : > { %v609_v59 = vpop.f32.mrb[0].mxu1 }
 0x11b   : > { %v610_v60 = vadd.f32 %v609_v59, %v354_v51  ;;  %v611_v61 = vpop.f32.mrb[1].mxu1 }
 0x11c   : > { %v612_v63 = vadd.f32 %v611_v61, %v356_v52  ;;  %v613_v0 = vpop.f32.mrb[2].mxu1 }
 0x11d   : > { %v651_v1 = vadd.f32 %v650_v55, %v610_v60  ;;  %v614_v2 = vpop.f32.mrb[3].mxu1 }
 0x11e   : > { %v653_v3 = vadd.f32 %v652_v56, %v612_v63 }
 0x11f   : > { %v659_v4 = vmul.f32 %v658_v62, %v651_v1 }
 0x120   : > { %v660_v5 = vmul.f32 %v658_v62, %v653_v3 }
 0x121   : > { %661 = vst [vmem:[%s242_s21] sm:$0xff] %v659_v4 }
 0x122   : > { %662 = vst [vmem:[%s242_s21 + $0x8] sm:$0xff] %v660_v5 }
 0x123 PF: > { %s16_s20 = sadd.s32 1, %s881_s20  }
 0x124   : > { %p13_p5 = scmp.ge.s32.totalorder %s16_s20, 4  }
 0x126   :  { %15 = sbr.rel (!%p13_p5) target bundleno = 2 (0x2), region = 73 }

</bundles_post_ra>
